<compile_context>
chip_gen: v6e
topology: v6e:2x2x1
jax: 0.10.0
libtpu: 0.0.40
codegen_flags: <defaults>
</compile_context>

<pallas_src>
import jax
import jax.numpy as jnp
from jax import lax
from jax.experimental import pallas as pl
from jax.experimental.pallas import tpu as pltpu


def _round_up(n, m):
    return ((n + m - 1) // m) * m


def _make_car_net_kernel(tb, sub, compute_dtype):
    assert tb % sub == 0
    n_chunks = tb // sub

    def kernel(x_ref,                    # (2, tb)   transposed input tile
               w1_ref, b1_ref,           # (16, 2), (16, 1)
               w2_ref, b2_ref,           # (32, 16), (32, 1)
               w3_ref, b3_ref,           # (64, 32), (64, 1)
               w4_ref, b4_ref,           # (3, 64),  (3, 1)
               o_ref):                   # (3, tb)
        # ---- hoisted, loop-invariant prep (once per grid step) -------------
        w1 = w1_ref[...]
        # fc1 (K=2) runs on the VPU; pre-broadcast its operands so the chunk
        # loop does pure FMAs (JAX does not CSE broadcast_in_dim).
        w1c0 = jnp.broadcast_to(w1[:, 0:1], (16, sub))
        w1c1 = jnp.broadcast_to(w1[:, 1:2], (16, sub))
        b1 = jnp.broadcast_to(b1_ref[...], (16, sub))
        b4 = jnp.broadcast_to(b4_ref[...], (3, sub))
        # Keep the bigger biases as columns: broadcasting b2/b3 to (32|64, sub)
        # would hold 8+16 f32 vregs for the whole tile -> spill risk with
        # unroll=2.  The per-chunk lane-broadcast in the add is cheap VPU work.
        b2 = b2_ref[...]                 # (32, 1) f32
        b3 = b3_ref[...]                 # (64, 1) f32
        # MXU operands in compute_dtype (bf16 by default: single-pass matmul
        # instead of the ~3-pass f32 scheme).  Accumulation stays f32.
        w2 = w2_ref[...].astype(compute_dtype)
        w3 = w3_ref[...].astype(compute_dtype)
        w4 = w4_ref[...].astype(compute_dtype)

        def chunk(c, carry):
            lo = pl.multiple_of(c * sub, sub)
            x0 = x_ref[0:1, pl.ds(lo, sub)]                   # (1, sub)
            x1 = x_ref[1:2, pl.ds(lo, sub)]                   # (1, sub)

            # fc1: K=2 contraction -> two VPU FMAs (an MXU matmul would be
            # <1% utilized on the contraction dim).
            h1 = jnp.maximum(w1c0 * x0 + w1c1 * x1 + b1, 0.0)  # (16, sub) f32
            h1 = h1.astype(compute_dtype)

            # fc2..fc4 on the MXU, f32 accumulation.
            h2 = jnp.dot(w2, h1, preferred_element_type=jnp.float32) + b2
            h2 = jnp.maximum(h2, 0.0).astype(compute_dtype)    # (32, sub)
            h3 = jnp.dot(w3, h2, preferred_element_type=jnp.float32) + b3
            h3 = jnp.maximum(h3, 0.0).astype(compute_dtype)    # (64, sub)
            out = jnp.dot(w4, h3, preferred_element_type=jnp.float32) + b4

            o_ref[:, pl.ds(lo, sub)] = out.astype(o_ref.dtype)  # lane-dense
            return carry

        # unroll=2 interleaves two independent dependent-matmul chains to hide
        # MXU result-FIFO latency; the fixed `sub` keeps live vregs bounded no
        # matter how large the batch tile grows.
        lax.fori_loop(0, n_chunks, chunk, 0, unroll=min(2, n_chunks))

    return kernel


def car_net_forward_fm(x_t, params, *, target_tb=32768, sub=256, use_bf16=True):
    """Feature-major fast path: x_t is (2, B) f32 -> (3, B) f32.

    target_tb: batch-tile width (lanes per grid step); big tiles amortize the
      ~0.35 us/step grid overhead.  At 32768 the double-buffered x+out tiles
      are ~1.3 MB, inside even v5e's 16 MiB default scoped-VMEM limit.
    sub: inner chunk width.  256 fills the 256-wide MXU N on v6e/v7x; use 128
      on v5e (128-wide MXUs, tighter vreg/store budget).
    use_bf16: bf16 MXU operands for fc2..fc4 (f32 accumulation), ~1e-3 rel err.
    """
    assert sub % 128 == 0 and target_tb % sub == 0
    B = x_t.shape[1]
    bp_min = _round_up(B, sub)
    tb = min(target_tb, bp_min)
    # Keep >=2 grid steps when the batch allows it so ("parallel",) can shard
    # the batch axis across both TensorCores on v7x.
    if bp_min >= 2 * sub:
        tb = min(tb, _round_up(pl.cdiv(bp_min, 2), sub))
    bp = _round_up(bp_min, tb)
    if bp != B:
        x_t = jnp.pad(x_t, ((0, 0), (0, bp - B)))   # padded lanes sliced away

    weight_args = (
        params["w1"], params["b1"],
        params["w2"], params["b2"],
        params["w3"], params["b3"],
        params["w4"], params["b4"],
    )

    def full_block(a):
        # Untiled full-array block (~11 KB total): weights stay VMEM-resident
        # across the whole grid (constant block index).
        return pl.BlockSpec(a.shape, lambda i: (0, 0))

    compute_dtype = jnp.bfloat16 if use_bf16 else jnp.float32
    out_t = pl.pallas_call(
        _make_car_net_kernel(tb, sub, compute_dtype),
        out_shape=jax.ShapeDtypeStruct((3, bp), jnp.float32),
        grid=(bp // tb,),
        in_specs=[pl.BlockSpec((2, tb), lambda i: (0, i))]
                 + [full_block(a) for a in weight_args],
        out_specs=pl.BlockSpec((3, tb), lambda i: (0, i)),
        compiler_params=pltpu.CompilerParams(
            dimension_semantics=("parallel",)),   # megacore sharding on v7x
    )(x_t, *weight_args)

    return out_t[:, :B]


def car_net_forward(x, params, **kw):
    """PyTorch-parity entry: x (B, 2) -> (B, 3), matching Car_Net.forward."""
    # TODO(synk): each transpose here is an extra HBM pass; callers that can
    # hold activations feature-major should use car_net_forward_fm directly.
    out_t = car_net_forward_fm(x.T.astype(jnp.float32), params, **kw)
    return out_t.T


def init_params(key):
    """Deterministic synthetic parameters with Car_Net shapes (PyTorch layout)."""
    sizes = [(2, 16), (16, 32), (32, 64), (64, 3)]
    params = {}
    for idx, (fan_in, fan_out) in enumerate(sizes, start=1):
        key, kw, kb = jax.random.split(key, 3)
        bound = 1.0 / (fan_in ** 0.5)  # nn.Linear default init range
        params[f"w{idx}"] = jax.random.uniform(
            kw, (fan_out, fan_in), jnp.float32, minval=-bound, maxval=bound)
        params[f"b{idx}"] = jax.random.uniform(
            kb, (fan_out, 1), jnp.float32, minval=-bound, maxval=bound)
    return params


def reference_forward(x, params):
    hp = jax.lax.Precision.HIGHEST
    h = jnp.maximum(jnp.dot(x, params["w1"].T, precision=hp) + params["b1"].T, 0.0)
    h = jnp.maximum(jnp.dot(h, params["w2"].T, precision=hp) + params["b2"].T, 0.0)
    h = jnp.maximum(jnp.dot(h, params["w3"].T, precision=hp) + params["b3"].T, 0.0)
    return jnp.dot(h, params["w4"].T, precision=hp) + params["b4"].T


if __name__ == "__main__":
    key = jax.random.PRNGKey(0)
    key, k1, k2 = jax.random.split(key, 3)
    params = init_params(key)

    # Case 1: B=300 -> padded to 512, 2 grid steps of tb=256, 1 chunk/step.
    # Case 2: B=1200 -> tb=768 (2 steps), 3 chunks/step: exercises the
    #         fori_loop with the unroll=2 remainder path and tail padding.
    for kx, B in ((k1, 300), (k2, 1200)):
        x = jax.random.normal(kx, (B, 2), dtype=jnp.float32)
        out = jax.block_until_ready(car_net_forward(x, params))
        ref = reference_forward(x, params)
        assert out.shape == (B, 3), out.shape
        # bf16 MXU inputs (f32 accumulation) -> ~1e-3 relative error budget.
        err = float(jnp.max(jnp.abs(out - ref)))
        assert jnp.allclose(out, ref, atol=2e-2, rtol=2e-2), f"mismatch: {err}"

    print("KERNEL_OK")
</pallas_src>

<mosaic_0001>
module attributes {stable_mosaic.version = 11 : i64} {
  func.func @kernel(%arg0: i32, %arg1: memref<2x256xf32, #tpu.memory_space<vmem>>, %arg2: memref<16x2xf32, #tpu.memory_space<vmem>>, %arg3: memref<16x1xf32, #tpu.memory_space<vmem>>, %arg4: memref<32x16xf32, #tpu.memory_space<vmem>>, %arg5: memref<32x1xf32, #tpu.memory_space<vmem>>, %arg6: memref<64x32xf32, #tpu.memory_space<vmem>>, %arg7: memref<64x1xf32, #tpu.memory_space<vmem>>, %arg8: memref<3x64xf32, #tpu.memory_space<vmem>>, %arg9: memref<3x1xf32, #tpu.memory_space<vmem>>, %arg10: memref<3x256xf32, #tpu.memory_space<vmem>>) attributes {dimension_semantics = [#tpu.dimension_semantics<parallel>], iteration_bounds = array<i64: 2>, scalar_prefetch = 0 : i64, scratch_operands = 0 : i64, tpu.core_type = #tpu.core_type<tc>, window_params = [{transform_indices = @transform_0, window_bounds = array<i64: 2, 256>}, {pipeline_mode = #tpu.pipeline_mode<synchronous>, transform_indices = @transform_1, window_bounds = array<i64: 16, 2>}, {pipeline_mode = #tpu.pipeline_mode<synchronous>, transform_indices = @transform_2, window_bounds = array<i64: 16, 1>}, {pipeline_mode = #tpu.pipeline_mode<synchronous>, transform_indices = @transform_3, window_bounds = array<i64: 32, 16>}, {pipeline_mode = #tpu.pipeline_mode<synchronous>, transform_indices = @transform_4, window_bounds = array<i64: 32, 1>}, {pipeline_mode = #tpu.pipeline_mode<synchronous>, transform_indices = @transform_5, window_bounds = array<i64: 64, 32>}, {pipeline_mode = #tpu.pipeline_mode<synchronous>, transform_indices = @transform_6, window_bounds = array<i64: 64, 1>}, {pipeline_mode = #tpu.pipeline_mode<synchronous>, transform_indices = @transform_7, window_bounds = array<i64: 3, 64>}, {pipeline_mode = #tpu.pipeline_mode<synchronous>, transform_indices = @transform_8, window_bounds = array<i64: 3, 1>}, {transform_indices = @transform_9, window_bounds = array<i64: 3, 256>}]} {
    %c0 = arith.constant 0 : index
    %c0_0 = arith.constant 0 : index
    %0 = vector.load %arg2[%c0, %c0_0] : memref<16x2xf32, #tpu.memory_space<vmem>>, vector<16x2xf32>
    %1 = vector.extract_strided_slice %0 {offsets = [0, 0], sizes = [16, 1], strides = [1, 1]} : vector<16x2xf32> to vector<16x1xf32>
    %2 = vector.shape_cast %1 : vector<16x1xf32> to vector<16x1xf32>
    %3 = vector.broadcast %2 : vector<16x1xf32> to vector<16x256xf32>
    %4 = vector.extract_strided_slice %0 {offsets = [0, 1], sizes = [16, 1], strides = [1, 1]} : vector<16x2xf32> to vector<16x1xf32>
    %5 = vector.shape_cast %4 : vector<16x1xf32> to vector<16x1xf32>
    %6 = vector.broadcast %5 : vector<16x1xf32> to vector<16x256xf32>
    %c0_1 = arith.constant 0 : index
    %c0_2 = arith.constant 0 : index
    %7 = vector.load %arg3[%c0_1, %c0_2] : memref<16x1xf32, #tpu.memory_space<vmem>>, vector<16x1xf32>
    %8 = vector.shape_cast %7 : vector<16x1xf32> to vector<16x1xf32>
    %9 = vector.broadcast %8 : vector<16x1xf32> to vector<16x256xf32>
    %c0_3 = arith.constant 0 : index
    %c0_4 = arith.constant 0 : index
    %10 = vector.load %arg9[%c0_3, %c0_4] : memref<3x1xf32, #tpu.memory_space<vmem>>, vector<3x1xf32>
    %11 = vector.shape_cast %10 : vector<3x1xf32> to vector<3x1xf32>
    %12 = vector.broadcast %11 : vector<3x1xf32> to vector<3x256xf32>
    %c0_5 = arith.constant 0 : index
    %c0_6 = arith.constant 0 : index
    %13 = vector.load %arg5[%c0_5, %c0_6] : memref<32x1xf32, #tpu.memory_space<vmem>>, vector<32x1xf32>
    %c0_7 = arith.constant 0 : index
    %c0_8 = arith.constant 0 : index
    %14 = vector.load %arg7[%c0_7, %c0_8] : memref<64x1xf32, #tpu.memory_space<vmem>>, vector<64x1xf32>
    %c0_9 = arith.constant 0 : index
    %c0_10 = arith.constant 0 : index
    %15 = vector.load %arg4[%c0_9, %c0_10] : memref<32x16xf32, #tpu.memory_space<vmem>>, vector<32x16xf32>
    %16 = arith.truncf %15 : vector<32x16xf32> to vector<32x16xbf16>
    %c0_11 = arith.constant 0 : index
    %c0_12 = arith.constant 0 : index
    %17 = vector.load %arg6[%c0_11, %c0_12] : memref<64x32xf32, #tpu.memory_space<vmem>>, vector<64x32xf32>
    %18 = arith.truncf %17 : vector<64x32xf32> to vector<64x32xbf16>
    %c0_13 = arith.constant 0 : index
    %c0_14 = arith.constant 0 : index
    %19 = vector.load %arg8[%c0_13, %c0_14] : memref<3x64xf32, #tpu.memory_space<vmem>>, vector<3x64xf32>
    %20 = arith.truncf %19 : vector<3x64xf32> to vector<3x64xbf16>
    %c0_i32 = arith.constant 0 : i32
    %c256_i32 = arith.constant 256 : i32
    %21 = arith.muli %c0_i32, %c256_i32 : i32
    %22 = tpu.assume_multiple %21, 256 : i32
    %c0_15 = arith.constant 0 : index
    %23 = arith.index_cast %22 : i32 to index
    %24 = vector.load %arg1[%c0_15, %23] : memref<2x256xf32, #tpu.memory_space<vmem>>, vector<1x256xf32>
    %c1 = arith.constant 1 : index
    %25 = arith.index_cast %22 : i32 to index
    %26 = vector.load %arg1[%c1, %25] : memref<2x256xf32, #tpu.memory_space<vmem>>, vector<1x256xf32>
    %27 = vector.broadcast %24 : vector<1x256xf32> to vector<16x256xf32>
    %28 = arith.mulf %3, %27 : vector<16x256xf32>
    %29 = vector.broadcast %26 : vector<1x256xf32> to vector<16x256xf32>
    %30 = arith.mulf %6, %29 : vector<16x256xf32>
    %31 = arith.addf %28, %30 : vector<16x256xf32>
    %32 = arith.addf %31, %9 : vector<16x256xf32>
    %cst = arith.constant 0.000000e+00 : f32
    %33 = vector.broadcast %cst : f32 to vector<16x256xf32>
    %34 = arith.maximumf %32, %33 : vector<16x256xf32>
    %35 = arith.truncf %34 : vector<16x256xf32> to vector<16x256xbf16>
    %cst_16 = arith.constant dense<0.000000e+00> : vector<32x256xf32>
    %36 = tpu.matmul %16, %35, %cst_16 {dimension_numbers = #tpu.dot_dimension_numbers<[1], [0], [0], [1], [0, 0, 1, 1], [], []>} : vector<32x16xbf16>, vector<16x256xbf16>, vector<32x256xf32> -> vector<32x256xf32>
    %37 = vector.broadcast %13 : vector<32x1xf32> to vector<32x256xf32>
    %38 = arith.addf %36, %37 : vector<32x256xf32>
    %cst_17 = arith.constant 0.000000e+00 : f32
    %39 = vector.broadcast %cst_17 : f32 to vector<32x256xf32>
    %40 = arith.maximumf %38, %39 : vector<32x256xf32>
    %41 = arith.truncf %40 : vector<32x256xf32> to vector<32x256xbf16>
    %cst_18 = arith.constant dense<0.000000e+00> : vector<64x256xf32>
    %42 = tpu.matmul %18, %41, %cst_18 {dimension_numbers = #tpu.dot_dimension_numbers<[1], [0], [0], [1], [0, 0, 1, 1], [], []>} : vector<64x32xbf16>, vector<32x256xbf16>, vector<64x256xf32> -> vector<64x256xf32>
    %43 = vector.broadcast %14 : vector<64x1xf32> to vector<64x256xf32>
    %44 = arith.addf %42, %43 : vector<64x256xf32>
    %cst_19 = arith.constant 0.000000e+00 : f32
    %45 = vector.broadcast %cst_19 : f32 to vector<64x256xf32>
    %46 = arith.maximumf %44, %45 : vector<64x256xf32>
    %47 = arith.truncf %46 : vector<64x256xf32> to vector<64x256xbf16>
    %cst_20 = arith.constant dense<0.000000e+00> : vector<3x256xf32>
    %48 = tpu.matmul %20, %47, %cst_20 {dimension_numbers = #tpu.dot_dimension_numbers<[1], [0], [0], [1], [0, 0, 1, 1], [], []>} : vector<3x64xbf16>, vector<64x256xbf16>, vector<3x256xf32> -> vector<3x256xf32>
    %49 = arith.addf %48, %12 : vector<3x256xf32>
    %c0_21 = arith.constant 0 : index
    %50 = arith.index_cast %22 : i32 to index
    %51 = vector.load %arg10[%c0_21, %50] : memref<3x256xf32, #tpu.memory_space<vmem>>, vector<3x256xf32>
    tpu.vector_store %arg10[%c0_21, %50], %49 {strides = array<i32>} : memref<3x256xf32, #tpu.memory_space<vmem>>, vector<3x256xf32>,
    %c1_i32 = arith.constant 1 : i32
    return
  }
  func.func @transform_0(%arg0: i32) -> (i32, i32) {
    %c0_i32 = arith.constant 0 : i32
    %c0_i32_0 = arith.constant 0 : i32
    return %c0_i32, %arg0 : i32, i32
  }
  func.func @transform_1(%arg0: i32) -> (i32, i32) {
    %c0_i32 = arith.constant 0 : i32
    %c0_i32_0 = arith.constant 0 : i32
    %c0_i32_1 = arith.constant 0 : i32
    return %c0_i32, %c0_i32_0 : i32, i32
  }
  func.func @transform_2(%arg0: i32) -> (i32, i32) {
    %c0_i32 = arith.constant 0 : i32
    %c0_i32_0 = arith.constant 0 : i32
    %c0_i32_1 = arith.constant 0 : i32
    return %c0_i32, %c0_i32_0 : i32, i32
  }
  func.func @transform_3(%arg0: i32) -> (i32, i32) {
    %c0_i32 = arith.constant 0 : i32
    %c0_i32_0 = arith.constant 0 : i32
    %c0_i32_1 = arith.constant 0 : i32
    return %c0_i32, %c0_i32_0 : i32, i32
  }
  func.func @transform_4(%arg0: i32) -> (i32, i32) {
    %c0_i32 = arith.constant 0 : i32
    %c0_i32_0 = arith.constant 0 : i32
    %c0_i32_1 = arith.constant 0 : i32
    return %c0_i32, %c0_i32_0 : i32, i32
  }
  func.func @transform_5(%arg0: i32) -> (i32, i32) {
    %c0_i32 = arith.constant 0 : i32
    %c0_i32_0 = arith.constant 0 : i32
    %c0_i32_1 = arith.constant 0 : i32
    return %c0_i32, %c0_i32_0 : i32, i32
  }
  func.func @transform_6(%arg0: i32) -> (i32, i32) {
    %c0_i32 = arith.constant 0 : i32
    %c0_i32_0 = arith.constant 0 : i32
    %c0_i32_1 = arith.constant 0 : i32
    return %c0_i32, %c0_i32_0 : i32, i32
  }
  func.func @transform_7(%arg0: i32) -> (i32, i32) {
    %c0_i32 = arith.constant 0 : i32
    %c0_i32_0 = arith.constant 0 : i32
    %c0_i32_1 = arith.constant 0 : i32
    return %c0_i32, %c0_i32_0 : i32, i32
  }
  func.func @transform_8(%arg0: i32) -> (i32, i32) {
    %c0_i32 = arith.constant 0 : i32
    %c0_i32_0 = arith.constant 0 : i32
    %c0_i32_1 = arith.constant 0 : i32
    return %c0_i32, %c0_i32_0 : i32, i32
  }
  func.func @transform_9(%arg0: i32) -> (i32, i32) {
    %c0_i32 = arith.constant 0 : i32
    %c0_i32_0 = arith.constant 0 : i32
    return %c0_i32, %arg0 : i32, i32
  }
}

</mosaic_0001>

<bundles_post_ra>
// kernel: tpu_custom_call.1
= control target key start
LH: loop header
LB: loop body
LE: loop exit
PB: predicated region body
PF: predicated region fallthrough
CT: control target
= control target key end

     0   :  { %14 = vsyncpa [#allocation3], 0  ;;  %s1193_s0 = inlined_call_operand.vmem [shape: f32[2,512], index: 0, kind: input, shape index: {}]   ;;  %s1194_s1 = inlined_call_operand.vmem [shape: f32[16,2], index: 1, kind: input, shape index: {}]   ;;  %s1195_s2 = inlined_call_operand.vmem [shape: f32[16,1], index: 2, kind: input, shape index: {}]   ;;  %s1196_s3 = inlined_call_operand.vmem [shape: f32[32,16], index: 3, kind: input, shape index: {}]   ;;  %s1197_s4 = inlined_call_operand.vmem [shape: f32[32,1], index: 4, kind: input, shape index: {}]   ;;  %s1198_s5 = inlined_call_operand.vmem [shape: f32[64,32], index: 5, kind: input, shape index: {}]   ;;  %s1199_s6 = inlined_call_operand.vmem [shape: f32[64,1], index: 6, kind: input, shape index: {}]   ;;  %s1200_s7 = inlined_call_operand.vmem [shape: f32[3,64], index: 7, kind: input, shape index: {}]   ;;  %s1201_s8 = inlined_call_operand.vmem [shape: f32[3,1], index: 8, kind: input, shape index: {}]   ;;  %s1202_s9 = inlined_call_operand.hbm [shape: f32[3,512], index: 9, kind: output, shape index: {}]  }
   0x1   :  { %16 = vsyncpa [#allocation3 + $0x1], 0  ;;  %s998_s30 = smov 0   ;;  %s1000_s10 = smov 0  }
   0x2   :  { %s1002_s11 = smov 0   ;;  %s1004_s12 = smov 0  }
   0x3 LB: > { %s1019_s13 = sadd.s32 4294967295, %s943_s12   ;;  %s818_s14 = sadd.s32 4294967294, %s943_s12   ;;  %s943_s12 = sphi %s1004_s12, %s1208_s12   ;;  %s939_s11 = sphi %s1002_s11, %s1207_s11   ;;  %s935_s10 = sphi %s1000_s10, %s1206_s10   ;;  %s931_s30 = sphi %s998_s30, %s1205_s30  }
   0x4   : > { %s1023_s15 = sadd.s32 1, %s943_s12   ;;  %s223_s16 = sadd.s32 1, %s939_s11 }
   0x5   : > { %s220_s17 = ssub.s32 %s943_s12, %s1023_s15  ;;  %p233_p0 = scmp.ne.s32.totalorder %s939_s11, %s935_s10 }
   0x6   : > { %p221_p1 = scmp.eq.s32.totalorder %s220_s17, 0  ;;  %p234_p2 = scmp.eq.s32.totalorder %s1019_s13, 1 }
   0x7   : > { %p239_p3 = scmp.ne.s32.totalorder %s935_s10, %s931_s30  ;;  %p240_p4 = scmp.eq.s32.totalorder %s818_s14, 1 }
   0x8   : > { %s1034_s18 = scalar_select %p221_p1, %s939_s11, %s223_s16  }
   0x9   : > { %p1036_p5 = por %p234_p2, %p233_p0  ;;  %p1040_p6 = por %p240_p4, %p239_p3 }
   0xa   : > { %p821_p7 = scmp.ge.s32.totalorder %s943_s12, 1  ;;  %p291_p8 = scmp.lt.s32.totalorder %s943_s12, 3 }
   0xc   : > { %p292_p9 = pnand %p821_p7, %p291_p8 }
   0xd   : > { %s823_s16 = sshll.u32 (!%p292_p9), %s1019_s13, 1  ;;  %s324_s26 = sand.u32 (!%p292_p9), 1, %s935_s10  }
   0xe   : > { %295 = sbr.rel (%p292_p9) target bundleno = 842 (0x34a), region = 56  ;;  %p328_p10 = scmp.lt.s32.totalorder (!%p292_p9), %s823_s16, 3 }
   0xf   : > { %s822_s27 = sshll.u32 (!%p292_p9), %s324_s26, 3  ;;  %s838_s28 = sshll.u32 (!%p292_p9), %s1019_s13, 7 }
  0x10   : > { %s326_s29 = scalar_lea.vmem (!%p292_p9), [#allocation2], %s822_s27  ;;  %s1158_s21 = scalar_lea.hbm (!%p292_p9), %s1202_s9, %s838_s28 }
  0x11   : > { %s759_s14 = sshll.u32 (!%p292_p9), %s326_s29, 4  ;;  %s745_s22 = scalar_lea.sflag (!%p292_p9), [#allocation3], %s324_s26  ;;  %s760_s14 = int_to_ptr.vmem [resolvable:$true] %s759_s14 }
  0x12   : > { %s947_s13 = smov (!%p292_p9), [#allocation2]  }
  0x13   : > { %v335_v0 = vld [vmem:[%s1194_s1] sm:$0xff]  ;;  %v945_v1 = vmov 1   ;;  %v946_v2 = vmov 0   ;;  %v336_v3 = vld [vmem:[%s1194_s1 + $0x8] sm:$0xff]  ;;  %v375_v6 = vld [vmem:[%s1197_s4 + $0x10] sm:$0xff]  ;;  %s1210_s16 = smov (!%p328_p10, %s823_s16), 3  ;;  %v409_v19 = vlaneseq }
  0x14   : > { %881 = vset.pattern.permute.xlu1 %v945_v1  ;;  %880 = vset.pattern.permute.xlu0 %v946_v2  ;;  %v355_v4 = vld [vmem:[%s1195_s2] sm:$0xff]  ;;  %v356_v5 = vld [vmem:[%s1195_s2 + $0x8] sm:$0xff]  ;;  %v376_v7 = vld [vmem:[%s1197_s4 + $0x18] sm:$0xff]  ;;  %s824_s17 = sshll.u32 %s1210_s16, 1  ;;  %vm472_vm0 = vcmask 130048   ;;  %vm584_vm1 = vcmask 261120  }
  0x15   : > { %348 = vperm.xlu1 %881, %v335_v0   ;;  %339 = vperm.xlu0 %880, %v335_v0   ;;  %v373_v8 = vld [vmem:[%s1197_s4] sm:$0xff]  ;;  %v374_v9 = vld [vmem:[%s1197_s4 + $0x8] sm:$0xff]  ;;  %v383_v10 = vld [vmem:[%s1199_s6 + $0x30] sm:$0xff]  ;;  %v410_v20 = vshrl.u32 %v409_v19, 7  ;;  %s331_s23 = scalar_lea.vmem %s1193_s0, %s824_s17  ;;  %vm694_vm2 = vcmask 523264   ;;  %s887_s24 = sshll.u32 %s947_s13, 4  ;;  %s888_s24 = int_to_ptr.vmem [resolvable:$false] %s887_s24 }
  0x16   : > { %511 = vmatprep.mubr.bf16.mxu0 %v946_v2  ;;  %629 = vmatprep.mubr.bf16.mxu1 %v946_v2  ;;  %v384_v11 = vld [vmem:[%s1199_s6 + $0x38] sm:$0xff]  ;;  %v381_v12 = vld [vmem:[%s1199_s6 + $0x20] sm:$0xff]  ;;  %v382_v13 = vld [vmem:[%s1199_s6 + $0x28] sm:$0xff]  ;;  %s889_s25 = scalar_lea.vmem %s888_s24, 256  ;;  %p890_p0 = scmp.lt.s32.totalorder %s760_s14, %s888_s24 }
  0x17   : > { %v379_v14 = vld [vmem:[%s1199_s6 + $0x10] sm:$0xff]  ;;  %v380_v15 = vld [vmem:[%s1199_s6 + $0x18] sm:$0xff]  ;;  %v377_v16 = vld [vmem:[%s1199_s6] sm:$0xff]  ;;  %v411_v21 = vsub.s32 0, %v410_v20  ;;  %v415_v22 = vsub.s32 1, %v410_v20 }
  0x18   : > { %v378_v17 = vld [vmem:[%s1199_s6 + $0x8] sm:$0xff]  ;;  %v367_v18 = vld [vmem:[%s1201_s8] sm:$0x7]  ;;  %v387_v60 = vld [vmem:[%s1196_s3 + $0x10] sm:$0xff] }
  0x19   : > { %352 = vperm.xlu1 %881, %v336_v3   ;;  %344 = vperm.xlu0 %880, %v336_v3   ;;  %v825_v23 = vld [vmem:[%s331_s23 + $0x1] ss:$2 sm:$0x3]  ;;  %v405_v24 = vld [vmem:[%s331_s23] ss:$2 sm:$0x3] }
  0x1a   : > { %v427_v25 = vrot.slane %v825_v23, %v411_v21  ;;  %v431_v26 = vrot.slane %v825_v23, %v415_v22  ;;  %v412_v27 = vrot.slane %v405_v24, %v411_v21  ;;  %v416_v28 = vrot.slane %v405_v24, %v415_v22  ;;  %v385_v55 = vld [vmem:[%s1196_s3] sm:$0xff]  ;;  %v386_v56 = vld [vmem:[%s1196_s3 + $0x8] sm:$0xff]  ;;  %v388_v61 = vld [vmem:[%s1196_s3 + $0x18] sm:$0xff]  ;;  %s883_s23 = scalar_lea.vmem %s760_s14, 128 }
  0x1b   : > { %v389_v59 = vpack.c.bf16 %v386_v56, %v385_v55  ;;  %v390_v62 = vpack.c.bf16 %v388_v61, %v387_v60  ;;  %p884_p11 = scmp.ne.s32.totalorder %s760_s14, %s883_s23  ;;  %p891_p1 = scmp.lt.s32.totalorder %s889_s25, %s883_s23 }
  0x1d   : > { %882 = vset.pattern.permute.xlu1 %v946_v2  ;;  %359 = vperm.xlu0 %880, %v355_v4   ;;  %p885_p12 = pnand %p884_p11, %p1036_p5  ;;  %p892_p2 = por %p891_p1, %p890_p0 }
  0x1e   : > { %364 = vperm.xlu1 %882, %v356_v5  }
  0x1f   : > { %p886_p13 = pneg %p885_p12 }
  0x21   : > { %464 = vperm.xlu0 %880, %v375_v6   ;;  %p893_p3 = pnand %p892_p2, %p886_p13 }
  0x22   : > { %469 = vperm.xlu1 %882, %v376_v7  }
  0x25   : > { %454 = vperm.xlu0 %880, %v373_v8  }
  0x26   : > { %459 = vperm.xlu1 %882, %v374_v9  }
  0x29   : > { %576 = vperm.xlu0 %880, %v383_v10  }
  0x2a   : > { %581 = vperm.xlu1 %882, %v384_v11  }
  0x2d   : > { %566 = vperm.xlu0 %880, %v381_v12  }
  0x2e   : > { %571 = vperm.xlu1 %882, %v382_v13  }
  0x31   : > { %556 = vperm.xlu0 %880, %v379_v14  }
  0x32   : > { %561 = vperm.xlu1 %882, %v380_v15  }
  0x35   : > { %546 = vperm.xlu0 %880, %v377_v16  }
  0x36   : > { %551 = vperm.xlu1 %882, %v378_v17  }
  0x39   : > { %370 = vperm.xlu0 %880, %v367_v18  }
  0x90   : > { %v349_v29 = vpop.permute.xlu1 %348  ;;  %v340_v30 = vpop.permute.xlu0 %339 }
  0x91   : > { %v434_v31 = vmul.f32 %v427_v25, %v349_v29  ;;  %v435_v32 = vmul.f32 %v431_v26, %v349_v29  ;;  %v419_v33 = vmul.f32 %v412_v27, %v340_v30  ;;  %v420_v34 = vmul.f32 %v416_v28, %v340_v30 }
  0x93   : > { %v438_v41 = vadd.f32 %v434_v31, %v419_v33  ;;  %v439_v42 = vadd.f32 %v435_v32, %v420_v34  ;;  %v391_v31 = vld [vmem:[%s1198_s5] sm:$0xff]  ;;  %v392_v32 = vld [vmem:[%s1198_s5 + $0x8] sm:$0xff] }
  0x94   : > { %v353_v35 = vpop.permute.xlu1 %352  ;;  %v345_v36 = vpop.permute.xlu0 %344  ;;  %v399_v34 = vpack.c.bf16 %v392_v32, %v391_v31 }
  0x95   : > { %v436_v37 = vmul.f32 %v427_v25, %v353_v35  ;;  %v437_v38 = vmul.f32 %v431_v26, %v353_v35  ;;  %v421_v39 = vmul.f32 %v412_v27, %v345_v36  ;;  %v422_v40 = vmul.f32 %v416_v28, %v345_v36  ;;  %v393_v35 = vld [vmem:[%s1198_s5 + $0x10] sm:$0xff]  ;;  %v394_v36 = vld [vmem:[%s1198_s5 + $0x18] sm:$0xff] }
  0x97   : > { %v440_v43 = vadd.f32 %v436_v37, %v421_v39  ;;  %v441_v44 = vadd.f32 %v437_v38, %v422_v40  ;;  %v400_v37 = vpack.c.bf16 %v394_v36, %v393_v35  ;;  %v395_v38 = vld [vmem:[%s1198_s5 + $0x20] sm:$0xff]  ;;  %v396_v39 = vld [vmem:[%s1198_s5 + $0x28] sm:$0xff] }
  0x98   : > { %v360_v45 = vpop.permute.xlu0 %359  ;;  %v401_v40 = vpack.c.bf16 %v396_v39, %v395_v38 }
  0x99   : > { %v442_v46 = vadd.f32 %v438_v41, %v360_v45  ;;  %v443_v47 = vadd.f32 %v439_v42, %v360_v45  ;;  %v365_v48 = vpop.permute.xlu1 %364  ;;  %v397_v41 = vld [vmem:[%s1198_s5 + $0x30] sm:$0xff]  ;;  %v398_v42 = vld [vmem:[%s1198_s5 + $0x38] sm:$0xff] }
  0x9a   : > { %v444_v49 = vadd.f32 %v440_v43, %v365_v48  ;;  %v445_v50 = vadd.f32 %v441_v44, %v365_v48  ;;  %v402_v43 = vpack.c.bf16 %v398_v42, %v397_v41 }
  0x9b   : > { %v446_v51 = vmax.f32 %v442_v46, 0.0  ;;  %v447_v52 = vmax.f32 %v443_v47, 0.0 }
  0x9c   : > { %v448_v53 = vmax.f32 %v444_v49, 0.0  ;;  %v449_v54 = vmax.f32 %v445_v50, 0.0  ;;  %v465_v5 = vpop.permute.xlu0 %464 }
  0x9d   : > { %v470_v3 = vpop.permute.xlu1 %469 }
  0x9e   : > { %v451_v57 = vpack.c.bf16 %v449_v54, %v447_v52  ;;  %v450_v58 = vpack.c.bf16 %v448_v53, %v446_v51 }
  0xa0   : > { %493 = vmatprep.subr.bf16.mxu0 %v451_v57  ;;  %v455_v13 = vpop.permute.xlu0 %454 }
  0xa1   : > { %494 = vmatpush1.bf16.msra.mxu0 %v450_v58  ;;  %v460_v8 = vpop.permute.xlu1 %459 }
  0xa4   : > { %826 = vmatmul.mubr.msk.bf16.vlgmr.msra.gmra.mxu0 %vm472_vm0, %v389_v59  ;;  %v577_v54 = vpop.permute.xlu0 %576 }
  0xa5   : > { %521 = vmatprep.mubr.bf16.mxu0 %v946_v2  ;;  %v582_v52 = vpop.permute.xlu1 %581 }
  0xa8   : > { %v567_v59 = vpop.permute.xlu0 %566 }
  0xa9   : > { %v572_v57 = vpop.permute.xlu1 %571 }
  0xac   : > { %827 = vmatmul.mubr.msk.bf16.gmra.mxu0 %vm472_vm0, %v390_v62 }
  0xad   : > { %730 = vmatprep.mubr.bf16.mxu0 %v946_v2 }
 0x164   : > { %v513_v63 = vpop.f32.mrf.mxu0 }
 0x165   : > { %v514_v23 = vadd.f32 %v513_v63, %v455_v13 }
 0x166   : > { %v515_v0 = vpop.f32.mrf.mxu0 }
 0x167   : > { %v516_v16 = vadd.f32 %v515_v0, %v455_v13  ;;  %v532_v30 = vmax.f32 %v514_v23, 0.0 }
 0x168   : > { %v517_v1 = vpop.f32.mrf.mxu0 }
 0x169   : > { %v518_v18 = vadd.f32 %v517_v1, %v460_v8  ;;  %v533_v25 = vmax.f32 %v516_v16, 0.0  ;;  %v562_v1 = vpop.permute.xlu1 %561 }
 0x16a   : > { %v519_v4 = vpop.f32.mrf.mxu0 }
 0x16b   : > { %v520_v10 = vadd.f32 %v519_v4, %v460_v8  ;;  %v534_v27 = vmax.f32 %v518_v18, 0.0 }
 0x16c   : > { %v523_v6 = vpop.f32.mrf.mxu0 }
 0x16d   : > { %v524_v14 = vadd.f32 %v523_v6, %v465_v5  ;;  %v535_v20 = vmax.f32 %v520_v10, 0.0  ;;  %v540_v33 = vpack.c.bf16 %v534_v27, %v532_v30 }
 0x16e   : > { %v525_v7 = vpop.f32.mrf.mxu0 }
 0x16f   : > { %v526_v11 = vadd.f32 %v525_v7, %v465_v5  ;;  %v536_v24 = vmax.f32 %v524_v14, 0.0  ;;  %v541_v29 = vpack.c.bf16 %v535_v20, %v533_v25  ;;  %v557_v7 = vpop.permute.xlu0 %556 }
 0x170   : > { %v527_v9 = vpop.f32.mrf.mxu0 }
 0x171   : > { %v528_v12 = vadd.f32 %v527_v9, %v470_v3  ;;  %v537_v21 = vmax.f32 %v526_v11, 0.0 }
 0x172   : > { %v529_v15 = vpop.f32.mrf.mxu0 }
 0x173   : > { %v530_v17 = vadd.f32 %v529_v15, %v470_v3  ;;  %v538_v19 = vmax.f32 %v528_v12, 0.0 }
 0x175   : > { %v539_v22 = vmax.f32 %v530_v17, 0.0  ;;  %v542_v28 = vpack.c.bf16 %v538_v19, %v536_v24  ;;  %v552_v19 = vpop.permute.xlu1 %551 }
 0x177   : > { %v543_v26 = vpack.c.bf16 %v539_v22, %v537_v21 }
 0x179   : > { %609 = vmatprep.subr.bf16.mxu1 %v543_v26  ;;  %v547_v26 = vpop.permute.xlu0 %546 }
 0x17a   : > { %610 = vmatpush1.bf16.msra.mxu1 %v542_v28 }
 0x17b   : > { %611 = vmatprep.subr.bf16.mxu1 %v541_v29 }
 0x17e   : > { %612 = vmatpush1.bf16.msra.mxu1 %v540_v33 }
 0x181   : > { %828 = vmatmul.mubr.msk.bf16.vlgmr.msra.gmra.mxu1 %vm584_vm1, %v399_v34 }
 0x182   : > { %639 = vmatprep.mubr.bf16.mxu1 %v946_v2 }
 0x189   : > { %829 = vmatmul.mubr.msk.bf16.gmra.mxu1 %vm584_vm1, %v400_v37 }
 0x18a   : > { %649 = vmatprep.mubr.bf16.mxu1 %v946_v2 }
 0x191   : > { %830 = vmatmul.mubr.msk.bf16.gmra.mxu1 %vm584_vm1, %v401_v40 }
 0x192   : > { %659 = vmatprep.mubr.bf16.mxu1 %v946_v2 }
 0x199   : > { %831 = vmatmul.mubr.msk.bf16.gmra.mxu1 %vm584_vm1, %v402_v43  ;;  %v403_v43 = vld [vmem:[%s1200_s7] sm:$0x7] }
 0x241   : > { %v631_v44 = vpop.f32.mrf.mxu1 }
 0x242   : > { %v632_v36 = vadd.f32 %v631_v44, %v547_v26 }
 0x243   : > { %v633_v45 = vpop.f32.mrf.mxu1 }
 0x244   : > { %v634_v29 = vadd.f32 %v633_v45, %v547_v26  ;;  %v670_v42 = vmax.f32 %v632_v36, 0.0 }
 0x245   : > { %v635_v46 = vpop.f32.mrf.mxu1 }
 0x246   : > { %v636_v31 = vadd.f32 %v635_v46, %v552_v19  ;;  %v671_v38 = vmax.f32 %v634_v29, 0.0  ;;  %v404_v46 = vpack.c.bf16 %v403_v43, %v403_v43 }
 0x247   : > { %v637_v47 = vpop.f32.mrf.mxu1 }
 0x248   : > { %v638_v23 = vadd.f32 %v637_v47, %v552_v19  ;;  %v672_v39 = vmax.f32 %v636_v31, 0.0  ;;  %v371_v47 = vpop.permute.xlu0 %370 }
 0x249   : > { %v641_v48 = vpop.f32.mrf.mxu1 }
 0x24a   : > { %v642_v27 = vadd.f32 %v641_v48, %v557_v7  ;;  %v673_v34 = vmax.f32 %v638_v23, 0.0  ;;  %v686_v45 = vpack.c.bf16 %v672_v39, %v670_v42 }
 0x24b   : > { %v643_v49 = vpop.f32.mrf.mxu1 }
 0x24c   : > { %v644_v16 = vadd.f32 %v643_v49, %v557_v7  ;;  %v674_v37 = vmax.f32 %v642_v27, 0.0  ;;  %v687_v41 = vpack.c.bf16 %v673_v34, %v671_v38 }
 0x24d   : > { %v645_v50 = vpop.f32.mrf.mxu1 }
 0x24e   : > { %v646_v20 = vadd.f32 %v645_v50, %v562_v1  ;;  %v675_v30 = vmax.f32 %v644_v16, 0.0 }
 0x24f   : > { %v647_v51 = vpop.f32.mrf.mxu1 }
 0x250   : > { %v648_v10 = vadd.f32 %v647_v51, %v562_v1  ;;  %v676_v32 = vmax.f32 %v646_v20, 0.0 }
 0x251   : > { %v651_v2 = vpop.f32.mrf.mxu1 }
 0x252   : > { %v652_v14 = vadd.f32 %v651_v2, %v567_v59  ;;  %v677_v24 = vmax.f32 %v648_v10, 0.0  ;;  %v688_v40 = vpack.c.bf16 %v676_v32, %v674_v37 }
 0x253   : > { %v653_v53 = vpop.f32.mrf.mxu1 }
 0x254   : > { %v654_v5 = vadd.f32 %v653_v53, %v567_v59  ;;  %v678_v28 = vmax.f32 %v652_v14, 0.0  ;;  %v689_v35 = vpack.c.bf16 %v677_v24, %v675_v30 }
 0x255   : > { %v655_v55 = vpop.f32.mrf.mxu1 }
 0x256   : > { %v656_v8 = vadd.f32 %v655_v55, %v572_v57  ;;  %v679_v17 = vmax.f32 %v654_v5, 0.0 }
 0x257   : > { %v657_v56 = vpop.f32.mrf.mxu1 }
 0x258   : > { %v658_v62 = vadd.f32 %v657_v56, %v572_v57  ;;  %v680_v21 = vmax.f32 %v656_v8, 0.0 }
 0x259   : > { %v661_v58 = vpop.f32.mrf.mxu1 }
 0x25a   : > { %v662_v3 = vadd.f32 %v661_v58, %v577_v54  ;;  %v681_v11 = vmax.f32 %v658_v62, 0.0  ;;  %v690_v33 = vpack.c.bf16 %v680_v21, %v678_v28 }
 0x25b   : > { %v663_v60 = vpop.f32.mrf.mxu1 }
 0x25c   : > { %v664_v63 = vadd.f32 %v663_v60, %v577_v54  ;;  %v682_v15 = vmax.f32 %v662_v3, 0.0  ;;  %v691_v25 = vpack.c.bf16 %v681_v11, %v679_v17 }
 0x25d   : > { %v665_v61 = vpop.f32.mrf.mxu1 }
 0x25e   : > { %v666_v0 = vadd.f32 %v665_v61, %v582_v52  ;;  %v683_v12 = vmax.f32 %v664_v63, 0.0 }
 0x25f   : > { %v667_v4 = vpop.f32.mrf.mxu1 }
 0x260   : > { %v668_v6 = vadd.f32 %v667_v4, %v582_v52  ;;  %v684_v9 = vmax.f32 %v666_v0, 0.0 }
 0x262   : > { %v685_v13 = vmax.f32 %v668_v6, 0.0  ;;  %v692_v22 = vpack.c.bf16 %v684_v9, %v682_v15 }
 0x264   : > { %v693_v18 = vpack.c.bf16 %v685_v13, %v683_v12 }
 0x266   : > { %706 = vmatprep.subr.bf16.mxu0 %v693_v18 }
 0x267   : > { %707 = vmatpush1.bf16.msra.mxu0 %v692_v22 }
 0x268   : > { %708 = vmatprep.subr.bf16.mxu0 %v691_v25 }
 0x26b   : > { %709 = vmatpush1.bf16.msra.mxu0 %v690_v33 }
 0x26c   : > { %710 = vmatprep.subr.bf16.mxu0 %v689_v35 }
 0x26f   : > { %711 = vmatpush1.bf16.msra.mxu0 %v688_v40 }
 0x270   : > { %712 = vmatprep.subr.bf16.mxu0 %v687_v41 }
 0x273   : > { %713 = vmatpush1.bf16.msra.mxu0 %v686_v45 }
 0x276   : > { %832 = vmatmul.mubr.msk.bf16.vlgmr.msra.gmra.mxu0 %vm694_vm2, %v404_v46 }
 0x336   : > { %v732_v44 = vpop.f32.mrf.mxu0 }
 0x337   : > { %v733_v49 = vadd.f32 %v732_v44, %v371_v47 }
 0x338   : > { %v734_v48 = vpop.f32.mrf.mxu0 }
 0x339   : > { %v735_v50 = vadd.f32 %v734_v48, %v371_v47 }
 0x33a   : > { %v736_v51 = vpop.f32.mrf.mxu0 }
 0x33b   : > { %v741_v2 = vcombine.low %v733_v49, %v735_v50 }
 0x33c   : > { %v737_v52 = vpop.f32.mrf.mxu0 }
 0x33d   : > { %743 = vst [vmem:[%s326_s29] sm:$0x77] %v741_v2 }
 0x33e   : > { %896 = shalt.err (!%p893_p3)
}
 0x33f   : > { %s897_s27 = scalar_lea.hbm %s1158_s21, 128  ;;  %s901_s29 = scalar_lea.hbm %s1202_s9, 256 }
 0x340   : > { %p898_p4 = scmp.ne.s32.totalorder %s1158_s21, %s897_s27  ;;  %p902_p9 = scmp.lt.s32.totalorder %s1158_s21, %s1202_s9 }
 0x341   : > { %p903_p10 = scmp.lt.s32.totalorder %s901_s29, %s897_s27 }
 0x342   : > { %p899_p7 = pnand %p898_p4, %p1036_p5 }
 0x343   : > { %p904_p11 = por %p903_p10, %p902_p9 }
 0x344   : > { %p900_p8 = pneg %p899_p7 }
 0x346   : > { %p905_p12 = pnand %p904_p11, %p900_p8 }
 0x348   : > { %908 = shalt.err (!%p905_p12)
}
 0x349   : > { %839 = dma.vmem_to_hbm [thread:$0]  (%p1036_p5), %s760_s14, 128, %s1158_s21, %s745_s22  }
 0x34a PF: > { %p845_p13 = scmp.ge.s32.totalorder %s943_s12, 2  ;;  %s771_s23 = sand.u32 1, %s931_s30  }
 0x34b   : > { %s772_s13 = scalar_lea.sflag [#allocation3], %s771_s23 }
 0x34c   : > { %p842_p0 = pnand %p845_p13, %p1040_p6 }
 0x34e   : > { %p843_p1 = pneg %p842_p0 }
 0x350   : > { %926 = dma.done.wait (%p843_p1), %s772_s13, 128  }
 0x351   : > { %928 = vsyncadd (%p843_p1), %s772_s13, 4294967168  ;;  %p19_p2 = scmp.ge.s32.totalorder %s1023_s15, 4   ;;  %s1205_s30 = smov %s935_s10 }
 0x352   : > { %s1206_s10 = smov %s939_s11  ;;  %s1207_s11 = smov %s1034_s18 }
 0x353   : > { %s1208_s12 = smov %s1023_s15  ;;  %21 = sbr.rel (!%p19_p2) target bundleno = 3 (0x3), region = 92 }
 0x358   :  { %777 = vsyncpa [#allocation3], 1 }
 0x359   :  { %779 = vsyncpa [#allocation3 + $0x1], 1 }

</bundles_post_ra>
